<compile_context>
chip_gen: v5e
topology: v5e:2x2
jax: 0.10.0
libtpu: 0.0.40
codegen_flags: <defaults>
</compile_context>

<pallas_src>
import functools

import numpy as np
import jax
import jax.numpy as jnp
from jax import lax
from jax.experimental import pallas as pl
from jax.experimental.pallas import tpu as pltpu


def _hist_kernel(x_ref, w_ref, wc_ref, o_ref, *, kk, out_scale, normalize_bins):
    """One (batch, spatial-tile) grid step.

    x_ref  : (1, KK, C, Ts)  window-offset-decomposed input pixels (spatial last)
    w_ref  : (C, B)          bin widths            (w[c, b] = widths[c*B + b])
    wc_ref : (C, B)          bin widths * centers
    o_ref  : (1, C, B, Ts)   pooled (averaged) normalized histogram
    """
    w = w_ref[...][:, :, None]            # (C, B, 1)  hoisted out of the loop
    wc = wc_ref[...][:, :, None]          # (C, B, 1)
    xw = x_ref[0]                         # (KK, C, Ts)
    acc = jnp.zeros(o_ref.shape[1:], jnp.float32)   # (C, B, Ts), lives in vregs
    for j in range(kk):                   # static, tiny (kernel_size ** 2)
        xj = xw[j]                                      # (C, Ts)
        t = w * xj[:, None, :] + wc                     # (C, B, Ts)   VPU broadcast
        y = jnp.exp(-(t * t))                           # EUP
        if normalize_bins:
            s = jnp.sum(y, axis=1) + 1e-5               # (C, Ts) per-channel bin sum
            inv = pl.reciprocal(s, approx=False)        # B x fewer recips than dividing y
            y = y * inv[:, None, :]                     # VPU multiply
        acc = acc + y
    o_ref[0] = acc * out_scale


def _pick_spatial_tile(howo, max_tile=2048):
    """Largest lane-friendly spatial tile: full extent when small, otherwise a
    multiple of 128 that divides Ho*Wo (respects the (8,128) BlockSpec rule)."""
    if howo <= max_tile:
        return howo
    for t in range(max_tile, 127, -128):
        if howo % t == 0:
            return t
    return howo  # TODO(synk): non-divisible large Ho*Wo falls back to a single tile


def rfb_histogram_forward(x_nchw, centers, widths, *, num_bins, kernel_size,
                          stride, padding=0, normalize_count=True,
                          normalize_bins=True):
    """x_nchw: (N, C, H, W) f32; centers/widths: (C*num_bins,) f32.
    Returns (N, C*num_bins, Ho, Wo) f32 (PyTorch NCHW convention)."""
    # TODO(synk): only the module's non-overlapping pool config is implemented
    # (stride == kernel_size, padding == 0, ceil_mode=False); overlapping / padded
    # pooling would need a separable-pool path.
    assert stride == kernel_size and padding == 0, "fast path needs stride==kernel, pad=0"

    N, C, H, W = x_nchw.shape
    B = num_bins
    k = kernel_size
    Ho = (H - k) // stride + 1
    Wo = (W - k) // stride + 1
    HoWo = Ho * Wo
    KK = k * k

    # Crop trailing rows/cols (floor / VALID pooling), then split every k x k window
    # into KK lane-dense (C, Ho*Wo) slabs: all remaining math is strictly per-pixel.
    x_c = x_nchw[:, :, :Ho * k, :Wo * k].astype(jnp.float32)
    x_win = jnp.transpose(x_c.reshape(N, C, Ho, k, Wo, k), (0, 3, 5, 1, 2, 4))
    x_win = x_win.reshape(N, KK, C, HoWo)

    widths_f = jnp.asarray(widths, jnp.float32)
    centers_f = jnp.asarray(centers, jnp.float32)
    w2 = widths_f.reshape(C, B)                 # tiny constants, no dense masks
    wc2 = (widths_f * centers_f).reshape(C, B)

    ts = _pick_spatial_tile(HoWo)
    n_s = HoWo // ts
    out_scale = (1.0 / KK) if normalize_count else 1.0

    kernel = functools.partial(_hist_kernel, kk=KK, out_scale=out_scale,
                               normalize_bins=normalize_bins)
    out = pl.pallas_call(
        kernel,
        out_shape=jax.ShapeDtypeStruct((N, C, B, HoWo), jnp.float32),
        grid_spec=pltpu.PrefetchScalarGridSpec(
            num_scalar_prefetch=0,
            grid=(N, n_s),                      # batch x independent spatial tiles
            in_specs=[
                pl.BlockSpec((1, KK, C, ts), lambda n, s: (n, 0, 0, s)),
                pl.BlockSpec((C, B), lambda n, s: (0, 0)),
                pl.BlockSpec((C, B), lambda n, s: (0, 0)),
            ],
            out_specs=pl.BlockSpec((1, C, B, ts), lambda n, s: (n, 0, 0, s)),
        ),
        compiler_params=pltpu.CompilerParams(
            dimension_semantics=("parallel", "parallel")),  # v7x: 2 TCs split grid
    )(x_win, w2, wc2)

    # (N, C, B, Ho*Wo) -> (N, C*B, Ho, Wo); channel order matches repeat_interleave.
    return out.reshape(N, C * B, Ho, Wo)


def rfb_histogram_reference(x_nchw, centers, widths, *, num_bins, kernel_size, stride):
    """Pure-JAX reference matching the PyTorch forward (padding=0, VALID pool)."""
    N, C, H, W = x_nchw.shape
    B = num_bins
    x_rep = jnp.repeat(x_nchw, B, axis=1)                               # repeat_interleave
    y = jnp.exp(-(widths[None, :, None, None] *
                  (x_rep + centers[None, :, None, None])) ** 2)
    s = y.reshape(N, C, B, H, W).sum(2) + 1e-5
    y = y / jnp.repeat(s, B, axis=1)
    pooled = lax.reduce_window(y, 0.0, lax.add,
                               (1, 1, kernel_size, kernel_size),
                               (1, 1, stride, stride), 'VALID') / float(kernel_size ** 2)
    return pooled


if __name__ == "__main__":
    # Module config: RFBHistogramLayer(in_channels=4, kernel_size=2, dim=2,
    #                                  num_bins=4, stride=2, padding=0)
    N, C, H, W = 2, 4, 16, 16
    num_bins, kernel_size, stride = 4, 2, 2

    key = jax.random.PRNGKey(0)
    kx, kc, kw = jax.random.split(key, 3)
    x = jax.random.normal(kx, (N, C, H, W), dtype=jnp.float32)
    # deterministic synthetic parameters (bin centers = conv bias, widths = dw-conv weight)
    centers = jax.random.normal(kc, (C * num_bins,), dtype=jnp.float32) * 0.5
    widths = jax.random.uniform(kw, (C * num_bins,), dtype=jnp.float32,
                                minval=0.5, maxval=1.5)

    out = rfb_histogram_forward(x, centers, widths, num_bins=num_bins,
                                kernel_size=kernel_size, stride=stride, padding=0)
    out = jax.block_until_ready(out)

    ref = rfb_histogram_reference(x, centers, widths, num_bins=num_bins,
                                  kernel_size=kernel_size, stride=stride)
    ref = jax.block_until_ready(ref)

    assert out.shape == (N, C * num_bins, H // stride, W // stride), out.shape
    np.testing.assert_allclose(np.asarray(out), np.asarray(ref), rtol=1e-4, atol=1e-5)
    print("KERNEL_OK")
</pallas_src>

<mosaic_0001>
module attributes {stable_mosaic.version = 11 : i64} {
  func.func @_hist_kernel(%arg0: i32, %arg1: i32, %arg2: memref<1x4x4x64xf32, #tpu.memory_space<vmem>>, %arg3: memref<4x4xf32, #tpu.memory_space<vmem>>, %arg4: memref<4x4xf32, #tpu.memory_space<vmem>>, %arg5: memref<1x4x4x64xf32, #tpu.memory_space<vmem>>) attributes {dimension_semantics = [#tpu.dimension_semantics<parallel>, #tpu.dimension_semantics<parallel>], iteration_bounds = array<i64: 2, 1>, scalar_prefetch = 0 : i64, scratch_operands = 0 : i64, tpu.core_type = #tpu.core_type<tc>, window_params = [{transform_indices = @transform_0, window_bounds = array<i64: 1, 4, 4, 64>}, {pipeline_mode = #tpu.pipeline_mode<synchronous>, transform_indices = @transform_1, window_bounds = array<i64: 4, 4>}, {pipeline_mode = #tpu.pipeline_mode<synchronous>, transform_indices = @transform_2, window_bounds = array<i64: 4, 4>}, {transform_indices = @transform_3, window_bounds = array<i64: 1, 4, 4, 64>}]} {
    %c0 = arith.constant 0 : index
    %c0_0 = arith.constant 0 : index
    %0 = vector.load %arg3[%c0, %c0_0] : memref<4x4xf32, #tpu.memory_space<vmem>>, vector<4x4xf32>
    %1 = vector.shape_cast %0 : vector<4x4xf32> to vector<4x4x1xf32>
    %c0_1 = arith.constant 0 : index
    %c0_2 = arith.constant 0 : index
    %2 = vector.load %arg4[%c0_1, %c0_2] : memref<4x4xf32, #tpu.memory_space<vmem>>, vector<4x4xf32>
    %3 = vector.shape_cast %2 : vector<4x4xf32> to vector<4x4x1xf32>
    %c0_3 = arith.constant 0 : index
    %c0_4 = arith.constant 0 : index
    %c0_5 = arith.constant 0 : index
    %c0_6 = arith.constant 0 : index
    %4 = vector.load %arg2[%c0_3, %c0_4, %c0_5, %c0_6] : memref<1x4x4x64xf32, #tpu.memory_space<vmem>>, vector<1x4x4x64xf32>
    %5 = vector.shape_cast %4 : vector<1x4x4x64xf32> to vector<4x4x64xf32>
    %cst = arith.constant 0.000000e+00 : f32
    %6 = vector.broadcast %cst : f32 to vector<4x4x64xf32>
    %7 = vector.extract_strided_slice %5 {offsets = [0, 0, 0], sizes = [1, 4, 64], strides = [1, 1, 1]} : vector<4x4x64xf32> to vector<1x4x64xf32>
    %8 = vector.shape_cast %7 : vector<1x4x64xf32> to vector<4x64xf32>
    %9 = vector.shape_cast %8 : vector<4x64xf32> to vector<4x1x64xf32>
    %10 = vector.broadcast %1 : vector<4x4x1xf32> to vector<4x4x64xf32>
    %11 = vector.broadcast %9 : vector<4x1x64xf32> to vector<4x4x64xf32>
    %12 = arith.mulf %10, %11 : vector<4x4x64xf32>
    %13 = vector.broadcast %3 : vector<4x4x1xf32> to vector<4x4x64xf32>
    %14 = arith.addf %12, %13 : vector<4x4x64xf32>
    %15 = arith.mulf %14, %14 : vector<4x4x64xf32>
    %cst_7 = arith.constant 0.000000e+00 : f32
    %16 = vector.broadcast %cst_7 : f32 to vector<4x4x64xf32>
    %17 = arith.subf %16, %15 : vector<4x4x64xf32>
    %18 = math.exp %17 : vector<4x4x64xf32>
    %cst_8 = arith.constant dense<0.000000e+00> : vector<4x64xf32>
    %19 = vector.multi_reduction <add>, %18, %cst_8 [1] : vector<4x4x64xf32> to vector<4x64xf32>
    %cst_9 = arith.constant 9.99999974E-6 : f32
    %20 = vector.broadcast %cst_9 : f32 to vector<4x64xf32>
    %21 = arith.addf %19, %20 : vector<4x64xf32>
    %22 = tpu.reciprocal %21 : vector<4x64xf32> -> vector<4x64xf32>
    %23 = vector.shape_cast %22 : vector<4x64xf32> to vector<4x1x64xf32>
    %24 = vector.broadcast %23 : vector<4x1x64xf32> to vector<4x4x64xf32>
    %25 = arith.mulf %18, %24 : vector<4x4x64xf32>
    %26 = arith.addf %6, %25 : vector<4x4x64xf32>
    %27 = vector.extract_strided_slice %5 {offsets = [1, 0, 0], sizes = [1, 4, 64], strides = [1, 1, 1]} : vector<4x4x64xf32> to vector<1x4x64xf32>
    %28 = vector.shape_cast %27 : vector<1x4x64xf32> to vector<4x64xf32>
    %29 = vector.shape_cast %28 : vector<4x64xf32> to vector<4x1x64xf32>
    %30 = vector.broadcast %1 : vector<4x4x1xf32> to vector<4x4x64xf32>
    %31 = vector.broadcast %29 : vector<4x1x64xf32> to vector<4x4x64xf32>
    %32 = arith.mulf %30, %31 : vector<4x4x64xf32>
    %33 = vector.broadcast %3 : vector<4x4x1xf32> to vector<4x4x64xf32>
    %34 = arith.addf %32, %33 : vector<4x4x64xf32>
    %35 = arith.mulf %34, %34 : vector<4x4x64xf32>
    %cst_10 = arith.constant 0.000000e+00 : f32
    %36 = vector.broadcast %cst_10 : f32 to vector<4x4x64xf32>
    %37 = arith.subf %36, %35 : vector<4x4x64xf32>
    %38 = math.exp %37 : vector<4x4x64xf32>
    %cst_11 = arith.constant dense<0.000000e+00> : vector<4x64xf32>
    %39 = vector.multi_reduction <add>, %38, %cst_11 [1] : vector<4x4x64xf32> to vector<4x64xf32>
    %cst_12 = arith.constant 9.99999974E-6 : f32
    %40 = vector.broadcast %cst_12 : f32 to vector<4x64xf32>
    %41 = arith.addf %39, %40 : vector<4x64xf32>
    %42 = tpu.reciprocal %41 : vector<4x64xf32> -> vector<4x64xf32>
    %43 = vector.shape_cast %42 : vector<4x64xf32> to vector<4x1x64xf32>
    %44 = vector.broadcast %43 : vector<4x1x64xf32> to vector<4x4x64xf32>
    %45 = arith.mulf %38, %44 : vector<4x4x64xf32>
    %46 = arith.addf %26, %45 : vector<4x4x64xf32>
    %47 = vector.extract_strided_slice %5 {offsets = [2, 0, 0], sizes = [1, 4, 64], strides = [1, 1, 1]} : vector<4x4x64xf32> to vector<1x4x64xf32>
    %48 = vector.shape_cast %47 : vector<1x4x64xf32> to vector<4x64xf32>
    %49 = vector.shape_cast %48 : vector<4x64xf32> to vector<4x1x64xf32>
    %50 = vector.broadcast %1 : vector<4x4x1xf32> to vector<4x4x64xf32>
    %51 = vector.broadcast %49 : vector<4x1x64xf32> to vector<4x4x64xf32>
    %52 = arith.mulf %50, %51 : vector<4x4x64xf32>
    %53 = vector.broadcast %3 : vector<4x4x1xf32> to vector<4x4x64xf32>
    %54 = arith.addf %52, %53 : vector<4x4x64xf32>
    %55 = arith.mulf %54, %54 : vector<4x4x64xf32>
    %cst_13 = arith.constant 0.000000e+00 : f32
    %56 = vector.broadcast %cst_13 : f32 to vector<4x4x64xf32>
    %57 = arith.subf %56, %55 : vector<4x4x64xf32>
    %58 = math.exp %57 : vector<4x4x64xf32>
    %cst_14 = arith.constant dense<0.000000e+00> : vector<4x64xf32>
    %59 = vector.multi_reduction <add>, %58, %cst_14 [1] : vector<4x4x64xf32> to vector<4x64xf32>
    %cst_15 = arith.constant 9.99999974E-6 : f32
    %60 = vector.broadcast %cst_15 : f32 to vector<4x64xf32>
    %61 = arith.addf %59, %60 : vector<4x64xf32>
    %62 = tpu.reciprocal %61 : vector<4x64xf32> -> vector<4x64xf32>
    %63 = vector.shape_cast %62 : vector<4x64xf32> to vector<4x1x64xf32>
    %64 = vector.broadcast %63 : vector<4x1x64xf32> to vector<4x4x64xf32>
    %65 = arith.mulf %58, %64 : vector<4x4x64xf32>
    %66 = arith.addf %46, %65 : vector<4x4x64xf32>
    %67 = vector.extract_strided_slice %5 {offsets = [3, 0, 0], sizes = [1, 4, 64], strides = [1, 1, 1]} : vector<4x4x64xf32> to vector<1x4x64xf32>
    %68 = vector.shape_cast %67 : vector<1x4x64xf32> to vector<4x64xf32>
    %69 = vector.shape_cast %68 : vector<4x64xf32> to vector<4x1x64xf32>
    %70 = vector.broadcast %1 : vector<4x4x1xf32> to vector<4x4x64xf32>
    %71 = vector.broadcast %69 : vector<4x1x64xf32> to vector<4x4x64xf32>
    %72 = arith.mulf %70, %71 : vector<4x4x64xf32>
    %73 = vector.broadcast %3 : vector<4x4x1xf32> to vector<4x4x64xf32>
    %74 = arith.addf %72, %73 : vector<4x4x64xf32>
    %75 = arith.mulf %74, %74 : vector<4x4x64xf32>
    %cst_16 = arith.constant 0.000000e+00 : f32
    %76 = vector.broadcast %cst_16 : f32 to vector<4x4x64xf32>
    %77 = arith.subf %76, %75 : vector<4x4x64xf32>
    %78 = math.exp %77 : vector<4x4x64xf32>
    %cst_17 = arith.constant dense<0.000000e+00> : vector<4x64xf32>
    %79 = vector.multi_reduction <add>, %78, %cst_17 [1] : vector<4x4x64xf32> to vector<4x64xf32>
    %cst_18 = arith.constant 9.99999974E-6 : f32
    %80 = vector.broadcast %cst_18 : f32 to vector<4x64xf32>
    %81 = arith.addf %79, %80 : vector<4x64xf32>
    %82 = tpu.reciprocal %81 : vector<4x64xf32> -> vector<4x64xf32>
    %83 = vector.shape_cast %82 : vector<4x64xf32> to vector<4x1x64xf32>
    %84 = vector.broadcast %83 : vector<4x1x64xf32> to vector<4x4x64xf32>
    %85 = arith.mulf %78, %84 : vector<4x4x64xf32>
    %86 = arith.addf %66, %85 : vector<4x4x64xf32>
    %cst_19 = arith.constant 2.500000e-01 : f32
    %87 = vector.broadcast %cst_19 : f32 to vector<4x4x64xf32>
    %88 = arith.mulf %86, %87 : vector<4x4x64xf32>
    %c0_20 = arith.constant 0 : index
    %c0_21 = arith.constant 0 : index
    %c0_22 = arith.constant 0 : index
    %c0_23 = arith.constant 0 : index
    %89 = vector.load %arg5[%c0_20, %c0_21, %c0_22, %c0_23] : memref<1x4x4x64xf32, #tpu.memory_space<vmem>>, vector<1x4x4x64xf32>
    %90 = vector.shape_cast %89 : vector<1x4x4x64xf32> to vector<4x4x64xf32>
    %91 = vector.shape_cast %88 : vector<4x4x64xf32> to vector<1x4x4x64xf32>
    tpu.vector_store %arg5[%c0_20, %c0_21, %c0_22, %c0_23], %91 {strides = array<i32>} : memref<1x4x4x64xf32, #tpu.memory_space<vmem>>, vector<1x4x4x64xf32>,
    return
  }
  func.func @transform_0(%arg0: i32, %arg1: i32) -> (i32, i32, i32, i32) {
    %c0_i32 = arith.constant 0 : i32
    %c0_i32_0 = arith.constant 0 : i32
    %c0_i32_1 = arith.constant 0 : i32
    return %arg0, %c0_i32, %c0_i32_0, %arg1 : i32, i32, i32, i32
  }
  func.func @transform_1(%arg0: i32, %arg1: i32) -> (i32, i32) {
    %c0_i32 = arith.constant 0 : i32
    %c0_i32_0 = arith.constant 0 : i32
    %c0_i32_1 = arith.constant 0 : i32
    return %c0_i32, %c0_i32_0 : i32, i32
  }
  func.func @transform_2(%arg0: i32, %arg1: i32) -> (i32, i32) {
    %c0_i32 = arith.constant 0 : i32
    %c0_i32_0 = arith.constant 0 : i32
    %c0_i32_1 = arith.constant 0 : i32
    return %c0_i32, %c0_i32_0 : i32, i32
  }
  func.func @transform_3(%arg0: i32, %arg1: i32) -> (i32, i32, i32, i32) {
    %c0_i32 = arith.constant 0 : i32
    %c0_i32_0 = arith.constant 0 : i32
    %c0_i32_1 = arith.constant 0 : i32
    return %arg0, %c0_i32, %c0_i32_0, %arg1 : i32, i32, i32, i32
  }
}

</mosaic_0001>

<bundles_post_ra>
// kernel: tpu_custom_call.1
= control target key start
LH: loop header
LB: loop body
LE: loop exit
PB: predicated region body
PF: predicated region fallthrough
CT: control target
= control target key end

     0   :  { %s1828_s0 = inlined_call_operand.hbm [shape: f32[2,4,4,64], index: 0, kind: input, shape index: {}]   ;;  %s1829_s1 = inlined_call_operand.hbm [shape: f32[4,4], index: 1, kind: input, shape index: {}]   ;;  %s1830_s2 = inlined_call_operand.hbm [shape: f32[4,4], index: 2, kind: input, shape index: {}]   ;;  %s1831_s3 = inlined_call_operand.hbm [shape: f32[2,4,4,64], index: 3, kind: output, shape index: {}]  }
   0x1   :  { %1832 = sst [smem:[#allocation12_spill]] %s1829_s1 }
   0x2   :  { %8 = vsyncpa [#allocation3], 0 }
   0x3   :  { %10 = vsyncpa [#allocation3 + $0x1], 0 }
   0x4   :  { %11 = vsyncpa [#allocation6], 0 }
   0x5   :  { %12 = vsyncpa [#allocation4], 0 }
   0x6   :  { %14 = vsyncpa [#allocation4 + $0x1], 0  ;;  %s1336_s12 = smov 0   ;;  %s1338_s13 = smov 0  }
   0x7   :  { %s1340_s14 = smov 0   ;;  %s1342_s15 = smov 0  }
   0x8   :  { %s1344_s16 = smov 0   ;;  %s1346_s17 = smov 0  }
   0x9 LB: > { %s957_s18 = sadd.s32 4294967295, %s1308_s17   ;;  %s958_s19 = sadd.s32 4294967294, %s1308_s17   ;;  %s1308_s17 = sphi %s1346_s17, %s20_s17   ;;  %s1304_s16 = sphi %s1344_s16, %s1863_s16   ;;  %s1300_s15 = sphi %s1342_s15, %s1862_s15   ;;  %s1296_s14 = sphi %s1340_s14, %s1861_s14   ;;  %s1292_s13 = sphi %s1338_s13, %s1860_s13   ;;  %s1288_s12 = sphi %s1336_s12, %s1859_s12  }
   0xa   : > { %s41_s20 = sadd.s32 1, %s1296_s14  ;;  %p48_p0 = scmp.ne.s32.totalorder %s1296_s14, %s1292_s13 }
   0xb   : > { %p49_p1 = scmp.eq.s32.totalorder %s1308_s17, 0  ;;  %p54_p2 = scmp.ne.s32.totalorder %s1292_s13, %s1288_s12 }
   0xc   : > { %p1374_p3 = scmp.eq.s32.totalorder %s957_s18, 0  ;;  %p122_p4 = scmp.eq.s32.totalorder %s957_s18, 1 }
   0xd   : > { %p1378_p5 = por %p49_p1, %p48_p0  ;;  %p128_p6 = scmp.eq.s32.totalorder %s958_s19, 1 }
   0xe   : > { %p1384_p7 = por %p1374_p3, %p54_p2  ;;  %p1388_p8 = por %p122_p4, %p48_p0 }
   0xf   : > { %p1392_p9 = por %p128_p6, %p54_p2  ;;  %p959_p10 = scmp.ge.s32.totalorder %s1308_s17, 1 }
  0x10   : > { %p135_p11 = scmp.lt.s32.totalorder %s1308_s17, 3  ;;  %s1838_s1 = sld [smem:[#allocation12_spill]] }
  0x11   : > { %s1310_s30 = smov [#allocation5]   ;;  %p962_p13 = scmp.ge.s32.totalorder %s1308_s17, 2 }
  0x12   : > { %p1401_p12 = pnand %p959_p10, %p135_p11  ;;  %s149_s4 = sshll.u32 %s1310_s30, 4  ;;  %s150_s4 = int_to_ptr.vmem [resolvable:$true] %s149_s4 }
  0x13   : > { %p1007_p1 = scmp.lt.s32.totalorder %s1308_s17, 2  ;;  %s159_s7 = sshll.u32 %s1830_s2, 4  ;;  %s160_s7 = int_to_ptr.hbm [resolvable:$true] %s159_s7 }
  0x14   : > { %p990_p0 = pneg %p1401_p12  ;;  %s1311_s9 = smov [#allocation7]  }
  0x15   : > { %p1416_p4 = pnand %p1007_p1, %p1378_p5  ;;  %s161_s10 = sshll.u32 %s1311_s9, 4  ;;  %s162_s10 = int_to_ptr.vmem [resolvable:$true] %s161_s10 }
  0x16   : > { %s147_s28 = sshll.u32 %s1838_s1, 4  ;;  %p991_p2 = pnand %p990_p0, %p1374_p3  ;;  %s148_s28 = int_to_ptr.hbm [resolvable:$true] %s147_s28 }
  0x17   : > { %s172_s11 = sand.u32 1, %s1296_s14   ;;  %s32_s18 = sadd.s32 1, %s1304_s16 }
  0x18   : > { %993 = dma.hbm_to_vmem [thread:$0]  (!%p991_p2), %s148_s28, 64, %s150_s4, [#allocation6]  }
  0x19   : > { %996 = dma.hbm_to_vmem [thread:$0]  (!%p991_p2), %s160_s7, 64, %s162_s10, [#allocation6]  }
  0x1a   : > { %s963_s19 = sshll.u32 %s172_s11, 4  ;;  %p34_p6 = scmp.ge.s32.totalorder %s32_s18, 2 }
  0x1b   : > { %s976_s26 = sshll.u32 %s1304_s16, 4  ;;  %s176_s27 = scalar_lea.vmem [#allocation2], %s963_s19 }
  0x1c   : > { %s185_s22 = sshll.u32 %s176_s27, 4  ;;  %s1865_s18 = smov (%p34_p6, %s32_s18), 0  ;;  %s186_s22 = int_to_ptr.vmem [resolvable:$true] %s185_s22 }
  0x1d   : > { %s182_s6 = scalar_lea.hbm %s1828_s0, %s976_s26  ;;  %s36_s28 = ssub.s32 %s1304_s16, %s1865_s18 }
  0x1e   : > { %s183_s4 = sshll.u32 %s182_s6, 4  ;;  %p39_p5 = scmp.eq.s32.totalorder %s36_s28, 0  ;;  %s184_s4 = int_to_ptr.hbm [resolvable:$true] %s183_s4 }
  0x1f   : > { %s173_s9 = scalar_lea.sflag [#allocation3], %s172_s11  ;;  %s1312_s10 = smov 64  }
  0x20   : > { %s1433_s7 = scalar_select %p39_p5, %s1296_s14, %s41_s20  }
  0x21   : > { %s1313_s1 = smov 4   ;;  %197 = sbr.rel (%p1401_p12) target bundleno = 309 (0x135), region = 32 }
  0x22   : > { %1000 = dma.hbm_to_vmem [thread:$0]  (!%p1416_p4), %s184_s4, 256, %s186_s22, %s173_s9, %s1312_s10, %s1312_s10, %s1313_s1  }
  0x23   : > { %s1440_s19 = sand.u32 (!%p1401_p12), 1, %s1292_s13  }
  0x24   : > { %s967_s26 = sshll.u32 (!%p1401_p12), %s1440_s19, 4  ;;  %s200_s27 = scalar_lea.sflag (!%p1401_p12), [#allocation3], %s1440_s19 }
  0x25   : > { %s1446_s20 = scalar_lea.vmem (!%p1401_p12), [#allocation2], %s967_s26 }
  0x26   : > { %1275 = dma.done.wait (%p1384_p7), %s200_s27, 256  }
  0x27   : > { %1277 = vsyncadd (%p1384_p7), %s200_s27, 4294967040 }
  0x28   : > { %1279 = dma.done.wait (%p1374_p3), [#allocation6], 128  }
  0x29   : > { %1281 = vsyncadd (%p1374_p3), [#allocation6], 4294967168  ;;  %v239_v0 = vlaneseq  ;;  %v237_v2 = vld [vmem:[#allocation5] sm:$0xf]  ;;  %v266_v5 = vld [vmem:[#allocation7] sm:$0xf] }
  0x2a   : > { %v252_v3 = vperm.slane %v237_v2, 2  ;;  %v238_v4 = vperm.slane %v237_v2, 0  ;;  %v267_v6 = vperm.slane %v266_v5, 0  ;;  %v259_v7 = vperm.slane %v237_v2, 3  ;;  %v1457_v12 = vld [vmem:[%s1446_s20] sm:$0xf] }
  0x2b   : > { %v240_v1 = vshrl.u32 %v239_v0, 7  ;;  %v245_v8 = vperm.slane %v237_v2, 1  ;;  %v274_v9 = vperm.slane %v266_v5, 1  ;;  %v288_v10 = vperm.slane %v266_v5, 3  ;;  %v1460_v13 = vld [vmem:[%s1446_s20 + $0x4] sm:$0xf] }
  0x2c   : > { %v281_v11 = vperm.slane %v266_v5, 2  ;;  %v1463_v14 = vld [vmem:[%s1446_s20 + $0x8] sm:$0xf]  ;;  %v1466_v15 = vld [vmem:[%s1446_s20 + $0xc] sm:$0xf]  ;;  %v303_v16 = vperm.slane %v1457_v12, 0 }
  0x2d   : > { %1066 = vset.pattern.permute.xlu1 %v240_v1  ;;  %1065 = vset.pattern.permute.xlu0 %v240_v1  ;;  %v436_v17 = vperm.slane %v1460_v13, 0  ;;  %v568_v18 = vperm.slane %v1463_v14, 0  ;;  %v700_v19 = vperm.slane %v1466_v15, 0  ;;  %v300_v23 = vrot.slane %v1457_v12, 1  ;;  %s1644_s1 = scalar_lea.vmem [#allocation8], %s967_s26  ;;  %s977_s21 = sshll.u32 %s1300_s15, 4 }
  0x2e   : > { %1067 = vset.pattern.permute.xlu2 %v240_v1  ;;  %v433_v28 = vrot.slane %v1460_v13, 1  ;;  %v565_v29 = vrot.slane %v1463_v14, 1  ;;  %v697_v30 = vrot.slane %v1466_v15, 1  ;;  %v302_v43 = vrot.slane %v1457_v12, 3  ;;  %s849_s8 = scalar_lea.hbm %s1831_s3, %s977_s21  ;;  %s850_s15 = sshll.u32 %s1644_s1, 4  ;;  %s851_s15 = int_to_ptr.vmem [resolvable:$true] %s850_s15 }
  0x2f   : > { %v304_v35 = vperm.slane %v300_v23, 0  ;;  %vm335_vm0 = vcmask 519168   ;;  %s852_s11 = sshll.u32 %s849_s8, 4  ;;  %s837_s22 = scalar_lea.sflag [#allocation4], %s1440_s19  ;;  %s853_s11 = int_to_ptr.hbm [resolvable:$true] %s852_s11 }
  0x30   : > { %v437_v40 = vperm.slane %v433_v28, 0  ;;  %v569_v41 = vperm.slane %v565_v29, 0  ;;  %v701_v42 = vperm.slane %v697_v30, 0  ;;  %v306_v60 = vperm.slane %v302_v43, 0  ;;  %s1236_s30 = sshra.s32 %s853_s11, 4  ;;  %s1242_s4 = scalar_lea.hbm %s1831_s3, 32  ;;  %s1237_s30 = int_to_ptr.hbm [resolvable:$true] %s1236_s30 }
  0x31   : > { %s1238_s5 = scalar_lea.hbm %s1237_s30, 16  ;;  %p1243_p11 = scmp.lt.s32.totalorder %s1237_s30, %s1831_s3 }
  0x32   : > { %p1239_p3 = scmp.ne.s32.totalorder %s1237_s30, %s1238_s5  ;;  %p1244_p12 = scmp.lt.s32.totalorder %s1242_s4, %s1238_s5 }
  0x34   : > { %p1240_p7 = pnand %p1239_p3, %p1388_p8  ;;  %p1245_p0 = por %p1244_p12, %p1243_p11 }
  0x35   : > { %257 = vperm.xlu1 %1066, %v252_v3   ;;  %243 = vperm.xlu0 %1065, %v238_v4  }
  0x36   : > { %272 = vperm.xlu2 %1067, %v267_v6   ;;  %p1241_p10 = pneg %p1240_p7 }
  0x38   : > { %p1246_p1 = pnand %p1245_p0, %p1241_p10 }
  0x3d   : > { %264 = vperm.xlu1 %1066, %v259_v7   ;;  %250 = vperm.xlu0 %1065, %v245_v8   ;;  %v435_v8 = vrot.slane %v1460_v13, 3 }
  0x3e   : > { %279 = vperm.xlu2 %1067, %v274_v9  }
  0x3f   : > { %v439_v30 = vperm.slane %v435_v8, 0 }
  0x45   : > { %293 = vperm.xlu1 %1066, %v288_v10   ;;  %286 = vperm.xlu0 %1065, %v281_v11  }
  0x90   : > { %v273_v20 = vpop.permute.xlu2 %272 }
  0x98   : > { %v280_v55 = vpop.permute.xlu2 %279 }
  0xa7   : > { %v1472_v21 = vpop.permute.xlu1 %257  ;;  %v244_v22 = vpop.permute.xlu0 %243 }
  0xa8   : > { %v311_v24 = vmul.f32 %v303_v16, %v244_v22  ;;  %v444_v25 = vmul.f32 %v436_v17, %v244_v22  ;;  %v576_v26 = vmul.f32 %v568_v18, %v244_v22  ;;  %v708_v27 = vmul.f32 %v700_v19, %v244_v22 }
  0xaa   : > { %v315_v31 = vadd.f32 %v311_v24, %v273_v20  ;;  %v448_v32 = vadd.f32 %v444_v25, %v273_v20  ;;  %v580_v33 = vadd.f32 %v576_v26, %v273_v20  ;;  %v712_v34 = vadd.f32 %v708_v27, %v273_v20 }
  0xab   : > { %v567_v26 = vrot.slane %v1463_v14, 3 }
  0xac   : > { %v319_v36 = vmul.f32 %v315_v31, %v315_v31  ;;  %v452_v37 = vmul.f32 %v448_v32, %v448_v32  ;;  %v584_v38 = vmul.f32 %v580_v33, %v580_v33  ;;  %v716_v39 = vmul.f32 %v712_v34, %v712_v34 }
  0xae   : > { %v323_v44 = vsub.f32 0.0, %v319_v36  ;;  %v456_v45 = vsub.f32 0.0, %v452_v37  ;;  %v588_v46 = vsub.f32 0.0, %v584_v38  ;;  %v720_v47 = vsub.f32 0.0, %v716_v39 }
  0xaf   : > { %v1479_v48 = vpop.permute.xlu1 %264  ;;  %v251_v49 = vpop.permute.xlu0 %250 }
  0xb0   : > { %v327_v50 = vmul.f32 1.442695, %v323_v44  ;;  %v460_v51 = vmul.f32 1.442695, %v456_v45  ;;  %v592_v52 = vmul.f32 1.442695, %v588_v46  ;;  %v312_v53 = vmul.f32 %v304_v35, %v251_v49 }
  0xb1   : > { %v724_v54 = vmul.f32 1.442695, %v720_v47  ;;  %v445_v56 = vmul.f32 %v437_v40, %v251_v49  ;;  %v577_v57 = vmul.f32 %v569_v41, %v251_v49  ;;  %v709_v58 = vmul.f32 %v701_v42, %v251_v49 }
  0xb2   : > { %1068 = vpow2.f32 %v327_v50  ;;  %v316_v59 = vadd.f32 %v312_v53, %v280_v55  ;;  %v314_v7 = vmul.f32 %v306_v60, %v1479_v48  ;;  %v699_v40 = vrot.slane %v1466_v15, 3 }
  0xb3   : > { %1070 = vpow2.f32 %v460_v51  ;;  %v449_v61 = vadd.f32 %v445_v56, %v280_v55  ;;  %v581_v62 = vadd.f32 %v577_v57, %v280_v55  ;;  %v713_v63 = vadd.f32 %v709_v58, %v280_v55 }
  0xb4   : > { %1072 = vpow2.f32 %v592_v52  ;;  %v320_v0 = vmul.f32 %v316_v59, %v316_v59  ;;  %v447_v43 = vmul.f32 %v439_v30, %v1479_v48  ;;  %v571_v44 = vperm.slane %v567_v26, 0 }
  0xb5   : > { %1074 = vpow2.f32 %v724_v54  ;;  %v453_v1 = vmul.f32 %v449_v61, %v449_v61  ;;  %v585_v2 = vmul.f32 %v581_v62, %v581_v62  ;;  %v717_v3 = vmul.f32 %v713_v63, %v713_v63 }
  0xb6   : > { %v324_v4 = vsub.f32 0.0, %v320_v0  ;;  %v301_v49 = vrot.slane %v1457_v12, 2  ;;  %v703_v12 = vperm.slane %v699_v40, 0 }
  0xb7   : > { %v457_v5 = vsub.f32 0.0, %v453_v1  ;;  %v589_v6 = vsub.f32 0.0, %v585_v2  ;;  %v1483_v9 = vpop.permute.xlu1 %293  ;;  %v721_v16 = vsub.f32 0.0, %v717_v3 }
  0xb8   : > { %v1485_v10 = vpop.eup %1068  ;;  %v329_v11 = vmul.f32 1.442695, %v324_v4  ;;  %v318_v22 = vadd.f32 %v314_v7, %v1483_v9  ;;  %v451_v2 = vadd.f32 %v447_v43, %v1483_v9  ;;  %v1528_v26 = vmul.f32 %v703_v12, %v1479_v48 }
  0xb9   : > { %v1487_v17 = vpop.eup %1070  ;;  %v336_v18 = vsel %vm335_vm0, %v1485_v10, 0.0  ;;  %v462_v19 = vmul.f32 1.442695, %v457_v5  ;;  %v594_v20 = vmul.f32 1.442695, %v589_v6  ;;  %v305_v6 = vperm.slane %v301_v49, 0 }
  0xba   : > { %v1492_v23 = vpop.eup %1072  ;;  %v337_v24 = vrot.slane %v336_v18, 4  ;;  %v468_v25 = vsel %vm335_vm0, %v1487_v17, 0.0  ;;  %1076 = vpow2.f32 %v329_v11  ;;  %v726_v34 = vmul.f32 1.442695, %v721_v16 }
  0xbb   : > { %v1497_v27 = vpop.eup %1074  ;;  %v469_v28 = vrot.slane %v468_v25, 4  ;;  %v600_v29 = vsel %vm335_vm0, %v1492_v23, 0.0  ;;  %1078 = vpow2.f32 %v462_v19  ;;  %v322_v37 = vmul.f32 %v318_v22, %v318_v22 }
  0xbc   : > { %v338_v31 = vadd.f32 %v337_v24, %v336_v18  ;;  %v601_v32 = vrot.slane %v600_v29, 4  ;;  %v732_v33 = vsel %vm335_vm0, %v1497_v27, 0.0  ;;  %1080 = vpow2.f32 %v594_v20 }
  0xbd   : > { %v470_v35 = vadd.f32 %v469_v28, %v468_v25  ;;  %v733_v36 = vrot.slane %v732_v33, 4  ;;  %1082 = vpow2.f32 %v726_v34  ;;  %v326_v54 = vsub.f32 0.0, %v322_v37 }
  0xbe   : > { %v339_v38 = vrot.slane %v338_v31, 2  ;;  %v602_v39 = vadd.f32 %v601_v32, %v600_v29  ;;  %v579_v25 = vmul.f32 %v571_v44, %v1479_v48  ;;  %v1530_v28 = vmul.f32 %v451_v2, %v451_v2 }
  0xbf   : > { %v471_v41 = vrot.slane %v470_v35, 2  ;;  %v734_v42 = vadd.f32 %v733_v36, %v732_v33  ;;  %v333_v18 = vmul.f32 1.442695, %v326_v54  ;;  %v1534_v30 = vmul.f32 %v305_v6, %v1472_v21 }
  0xc0   : > { %v1505_v45 = vpop.eup %1076  ;;  %v340_v46 = vadd.f32 %v339_v38, %v338_v31  ;;  %v603_v47 = vrot.slane %v602_v39, 2  ;;  %v434_v31 = vrot.slane %v1460_v13, 2  ;;  %v1551_v40 = vadd.f32 %v579_v25, %v1483_v9 }
  0xc1   : > { %v1508_v50 = vpop.eup %1078  ;;  %v472_v51 = vadd.f32 %v471_v41, %v470_v35  ;;  %v735_v52 = vrot.slane %v734_v42, 2  ;;  %v343_v53 = vsel %vm335_vm0, %v1505_v45, 0.0 }
  0xc2   : > { %v341_v55 = vrot.slane %v340_v46, 1  ;;  %v604_v56 = vadd.f32 %v603_v47, %v602_v39  ;;  %v344_v57 = vrot.slane %v343_v53, 4  ;;  %v475_v58 = vsel %vm335_vm0, %v1508_v50, 0.0  ;;  %v1514_v59 = vpop.eup %1080 }
  0xc3   : > { %v473_v60 = vrot.slane %v472_v51, 1  ;;  %v736_v61 = vadd.f32 %v735_v52, %v734_v42  ;;  %v476_v62 = vrot.slane %v475_v58, 4  ;;  %v1517_v7 = vpop.eup %1082  ;;  %v607_v16 = vsel %vm335_vm0, %v1514_v59, 0.0 }
  0xc4   : > { %v342_v63 = vadd.f32 %v341_v55, %v340_v46  ;;  %v605_v0 = vrot.slane %v604_v56, 1  ;;  %v345_v1 = vadd.f32 %v344_v57, %v343_v53  ;;  %v608_v29 = vrot.slane %v607_v16, 4 }
  0xc5   : > { %v474_v3 = vadd.f32 %v473_v60, %v472_v51  ;;  %v737_v4 = vrot.slane %v736_v61, 1  ;;  %v477_v5 = vadd.f32 %v476_v62, %v475_v58  ;;  %v1543_v34 = vsel %vm335_vm0, %v1517_v7, 0.0 }
  0xc6   : > { %v1519_v8 = vadd.f32 1e-05, %v342_v63  ;;  %v606_v11 = vadd.f32 %v605_v0, %v604_v56  ;;  %v346_v22 = vrot.slane %v345_v1, 2  ;;  %v459_v39 = vsub.f32 0.0, %v1530_v28 }
  0xc7   : > { %v1523_v19 = vadd.f32 1e-05, %v474_v3  ;;  %v738_v20 = vadd.f32 %v737_v4, %v736_v61  ;;  %v478_v24 = vrot.slane %v477_v5, 2  ;;  %v609_v42 = vadd.f32 %v608_v29, %v607_v16 }
  0xc8   : > { %1084 = vrcp.f32 %v1519_v8  ;;  %v1537_v32 = vadd.f32 1e-05, %v606_v11  ;;  %v377_v48 = vand.u32 2147483647, %v1519_v8  ;;  %v379_v35 = vand.u32 2147483648, %v1519_v8 }
  0xc9   : > { %1086 = vrcp.f32 %v1523_v19  ;;  %v1539_v33 = vadd.f32 1e-05, %v738_v20  ;;  %v347_v36 = vadd.f32 %v346_v22, %v345_v1  ;;  %v479_v37 = vadd.f32 %v478_v24, %v477_v5 }
  0xca   : > { %1088 = vpow2.f32 %v333_v18  ;;  %v509_v38 = vand.u32 2147483647, %v1523_v19  ;;  %v511_v41 = vand.u32 2147483648, %v1523_v19  ;;  %v740_v43 = vrot.slane %v1543_v34, 4 }
  0xcb   : > { %1090 = vrcp.f32 %v1537_v32  ;;  %vm373_vm1 = vweird.f32 %v1519_v8  ;;  %vm505_vm2 = vweird.f32 %v1523_v19  ;;  %v348_v46 = vrot.slane %v347_v36, 1 }
  0xcc   : > { %1092 = vrcp.f32 %v1539_v33  ;;  %v480_v47 = vrot.slane %v479_v37, 1  ;;  %vm1559_vm3 = vcmp.eq.f32.partialorder %v377_v48, 8.507059e+37  ;;  %v380_v53 = vor.u32 1.1754944e-38, %v379_v35 }
  0xcd   : > { %v641_v54 = vand.u32 2147483647, %v1537_v32  ;;  %v643_v55 = vand.u32 2147483648, %v1537_v32  ;;  %vm1568_vm4 = vcmp.eq.f32.partialorder %v509_v38, 8.507059e+37  ;;  %v773_v60 = vand.u32 2147483647, %v1539_v33 }
  0xce   : > { %v1085_v44 = vpop.eup %1084  ;;  %v349_v61 = vadd.f32 %v348_v46, %v347_v36  ;;  %v481_v62 = vadd.f32 %v480_v47, %v479_v37  ;;  %v512_v63 = vor.u32 1.1754944e-38, %v511_v41  ;;  %vm637_vm5 = vweird.f32 %v1537_v32 }
  0xcf   : > { %v1087_v49 = vpop.eup %1086  ;;  %v369_v51 = vmul.f32 %v1085_v44, %v1519_v8  ;;  %v775_v0 = vand.u32 2147483648, %v1539_v33  ;;  %vm769_vm6 = vweird.f32 %v1539_v33  ;;  %v610_v5 = vrot.slane %v609_v42, 2 }
  0xd0   : > { %v1565_v56 = vpop.eup %1088  ;;  %v501_v57 = vmul.f32 %v1087_v49, %v1523_v19  ;;  %v1576_v3 = vadd.f32 1e-05, %v349_v61  ;;  %v1578_v4 = vadd.f32 1e-05, %v481_v62  ;;  %vm374_vm7 = vweird.f32 %v1085_v44 }
  0xd1   : > { %v370_v12 = vsub.f32 1.0, %v369_v51  ;;  %v1091_v1 = vpop.eup %1090  ;;  %vm1581_vm8 = vcmp.eq.f32.partialorder %v641_v54, 8.507059e+37  ;;  %v644_v20 = vor.u32 1.1754944e-38, %v643_v55  ;;  %vm506_vm9 = vweird.f32 %v1087_v49  ;;  %vm375_vm11 = vmor %vm373_vm1, %vm374_vm7 }
  0xd2   : > { %v502_v2 = vsub.f32 1.0, %v501_v57  ;;  %v1093_v6 = vpop.eup %1092  ;;  %v633_v16 = vmul.f32 %v1091_v1, %v1537_v32  ;;  %vm1586_vm10 = vcmp.eq.f32.partialorder %v773_v60, 8.507059e+37  ;;  %1094 = vrcp.f32 %v1576_v3  ;;  %vm507_vm12 = vmor %vm505_vm2, %vm506_vm9 }
  0xd3   : > { %v371_v11 = vmul.f32 %v1085_v44, %v370_v12  ;;  %v765_v24 = vmul.f32 %v1093_v6, %v1539_v33  ;;  %v776_v35 = vor.u32 1.1754944e-38, %v775_v0  ;;  %v357_v36 = vsel %vm335_vm0, %v1565_v56, 0.0 }
  0xd4   : > { %v503_v22 = vmul.f32 %v1087_v49, %v502_v2  ;;  %v634_v48 = vsub.f32 1.0, %v633_v16  ;;  %1096 = vrcp.f32 %v1578_v4  ;;  %v611_v41 = vadd.f32 %v610_v5, %v609_v42 }
  0xd5   : > { %v372_v29 = vadd.f32 %v1085_v44, %v371_v11  ;;  %v766_v38 = vsub.f32 1.0, %v765_v24  ;;  %vm638_vm13 = vweird.f32 %v1091_v1  ;;  %v741_v51 = vadd.f32 %v740_v43, %v1543_v34 }
  0xd6   : > { %v504_v37 = vadd.f32 %v1087_v49, %v503_v22  ;;  %v635_v47 = vmul.f32 %v1091_v1, %v634_v48  ;;  %vm770_vm14 = vweird.f32 %v1093_v6  ;;  %vm639_vm15 = vmor %vm637_vm5, %vm638_vm13  ;;  %v391_v43 = vand.u32 2147483647, %v1576_v3 }
  0xd7   : > { %v376_v46 = vsel %vm375_vm11, %v1085_v44, %v372_v29  ;;  %v767_v57 = vmul.f32 %v1093_v6, %v766_v38  ;;  %v358_v44 = vrot.slane %v357_v36, 4  ;;  %v612_v52 = vrot.slane %v611_v41, 1  ;;  %vm771_vm1 = vmor %vm769_vm6, %vm770_vm14 }
  0xd8   : > { %v381_v54 = vsel %vm1559_vm3, %v380_v53, %v376_v46  ;;  %v508_v55 = vsel %vm507_vm12, %v1087_v49, %v504_v37  ;;  %v636_v42 = vadd.f32 %v1091_v1, %v635_v47  ;;  %v1095_v61 = vpop.eup %1094  ;;  %v393_v53 = vand.u32 2147483648, %v1576_v3 }
  0xd9   : > { %v424_v8 = vmul.f32 %v1485_v10, %v381_v54  ;;  %v513_v60 = vsel %vm1568_vm4, %v512_v63, %v508_v55  ;;  %v768_v34 = vadd.f32 %v1093_v6, %v767_v57  ;;  %v383_v10 = vmul.f32 %v1095_v61, %v1576_v3 }
  0xda   : > { %v556_v19 = vmul.f32 %v1487_v17, %v513_v60  ;;  %v640_v49 = vsel %vm639_vm15, %v1091_v1, %v636_v42  ;;  %v523_v58 = vand.u32 2147483647, %v1578_v4  ;;  %v1097_v62 = vpop.eup %1096  ;;  %v525_v63 = vand.u32 2147483648, %v1578_v4 }
  0xdb   : > { %v645_v17 = vsel %vm1581_vm8, %v644_v20, %v640_v49  ;;  %v772_v32 = vsel %vm771_vm1, %v1093_v6, %v768_v34  ;;  %v384_v1 = vsub.f32 1.0, %v383_v10  ;;  %v515_v2 = vmul.f32 %v1097_v62, %v1578_v4 }
  0xdc   : > { %v560_v12 = vadd.f32 %v556_v19, %v424_v8  ;;  %v688_v0 = vmul.f32 %v1492_v23, %v645_v17  ;;  %v777_v33 = vsel %vm1586_vm10, %v776_v35, %v772_v32  ;;  %vm388_vm2 = vweird.f32 %v1095_v61 }
  0xdd   : > { %v820_v5 = vmul.f32 %v1497_v27, %v777_v33  ;;  %v613_v11 = vadd.f32 %v612_v52, %v611_v41  ;;  %v742_v16 = vrot.slane %v741_v51, 2  ;;  %v385_v24 = vmul.f32 %v1095_v61, %v384_v1 }
  0xde   : > { %v692_v22 = vadd.f32 %v688_v0, %v560_v12  ;;  %v516_v18 = vsub.f32 1.0, %v515_v2  ;;  %v359_v20 = vadd.f32 %v358_v44, %v357_v36  ;;  %vm520_vm3 = vweird.f32 %v1097_v62 }
  0xdf   : > { %v1621_v6 = vadd.f32 1e-05, %v613_v11  ;;  %v743_v29 = vadd.f32 %v742_v16, %v741_v51  ;;  %v466_v23 = vmul.f32 1.442695, %v459_v39  ;;  %v386_v48 = vadd.f32 %v1095_v61, %v385_v24 }
  0xe0   : > { %v824_v25 = vadd.f32 %v820_v5, %v692_v22  ;;  %v517_v35 = vmul.f32 %v1097_v62, %v516_v18  ;;  %v360_v37 = vrot.slane %v359_v20, 2  ;;  %vm387_vm4 = vweird.f32 %v1576_v3 }
  0xe1   : > { %vm1626_vm5 = vcmp.eq.f32.partialorder %v391_v43, 8.507059e+37  ;;  %1098 = vrcp.f32 %v1621_v6  ;;  %v587_v36 = vmul.f32 %v1551_v40, %v1551_v40  ;;  %vm1634_vm6 = vmor %vm387_vm4, %vm388_vm2  ;;  %vm519_vm7 = vweird.f32 %v1578_v4 }
  0xe2   : > { %v828_v38 = vmul.f32 0.25, %v824_v25  ;;  %v518_v39 = vadd.f32 %v1097_v62, %v517_v35  ;;  %v744_v3 = vrot.slane %v743_v29, 1  ;;  %v390_v41 = vsel %vm1634_vm6, %v1095_v61, %v386_v48  ;;  %vm521_vm8 = vmor %vm519_vm7, %vm520_vm3 }
  0xe3   : > { %v394_v46 = vor.u32 1.1754944e-38, %v393_v53  ;;  %vm524_vm9 = vcmp.eq.f32.partialorder %v523_v58, 8.507059e+37  ;;  %v361_v47 = vadd.f32 %v360_v37, %v359_v20  ;;  %v526_v40 = vor.u32 1.1754944e-38, %v525_v63 }
  0xe4   : > { %v522_v51 = vsel %vm521_vm8, %v1097_v62, %v518_v39  ;;  %v745_v54 = vadd.f32 %v744_v3, %v743_v29  ;;  %1100 = vpow2.f32 %v466_v23  ;;  %832 = vst.msk [vmem:[%s1644_s1] sm:$0xf] %vm335_vm0, %v828_v38  ;;  %v655_v4 = vand.u32 2147483647, %v1621_v6 }
  0xe5   : > { %v362_v55 = vrot.slane %v361_v47, 1  ;;  %v591_v57 = vsub.f32 0.0, %v587_v36  ;;  %v715_v8 = vadd.f32 %v1528_v26, %v1483_v9  ;;  %v395_v60 = vsel %vm1626_vm5, %v394_v46, %v390_v41 }
  0xe6   : > { %v527_v42 = vsel %vm524_vm9, %v526_v40, %v522_v51  ;;  %v1653_v44 = vadd.f32 1e-05, %v745_v54  ;;  %v438_v61 = vperm.slane %v434_v31, 0  ;;  %v657_v34 = vand.u32 2147483648, %v1621_v6 }
  0xe7   : > { %v1099_v19 = vpop.eup %1098  ;;  %v363_v43 = vadd.f32 %v362_v55, %v361_v47  ;;  %v598_v52 = vmul.f32 1.442695, %v591_v57  ;;  %v719_v49 = vmul.f32 %v715_v8, %v715_v8  ;;  %vm651_vm10 = vweird.f32 %v1621_v6 }
  0xe8   : > { %v647_v10 = vmul.f32 %v1099_v19, %v1621_v6  ;;  %1102 = vrcp.f32 %v1653_v44  ;;  %v566_v9 = vrot.slane %v1463_v14, 2  ;;  %v425_v26 = vmul.f32 %v1505_v45, %v395_v60 }
  0xe9   : > { %v557_v53 = vmul.f32 %v1508_v50, %v527_v42  ;;  %vm1664_vm11 = vcmp.eq.f32.partialorder %v655_v4, 8.507059e+37  ;;  %v1668_v31 = vadd.f32 1e-05, %v363_v43  ;;  %1104 = vpow2.f32 %v598_v52  ;;  %v1676_v50 = vpop.permute.xlu0 %286 }
  0xea   : > { %v1670_v58 = vpop.eup %1100  ;;  %v648_v62 = vsub.f32 1.0, %v647_v10  ;;  %v723_v12 = vsub.f32 0.0, %v719_v49  ;;  %v698_v17 = vrot.slane %v1466_v15, 2  ;;  %v658_v32 = vor.u32 1.1754944e-38, %v657_v34 }
  0xeb   : > { %v787_v14 = vand.u32 2147483647, %v1653_v44  ;;  %v789_v45 = vand.u32 2147483648, %v1653_v44  ;;  %1106 = vrcp.f32 %v1668_v31  ;;  %vm652_vm12 = vweird.f32 %v1099_v19 }
  0xec   : > { %v649_v63 = vmul.f32 %v1099_v19, %v648_v62  ;;  %v489_v0 = vsel %vm335_vm0, %v1670_v58, 0.0  ;;  %v570_v33 = vperm.slane %v566_v9, 0  ;;  %v561_v1 = vadd.f32 %v557_v53, %v425_v26  ;;  %vm653_vm14 = vmor %vm651_vm10, %vm652_vm12 }
  0xed   : > { %v490_v2 = vrot.slane %v489_v0, 4  ;;  %v730_v5 = vmul.f32 1.442695, %v723_v12  ;;  %v446_v15 = vmul.f32 %v438_v61, %v1472_v21  ;;  %vm783_vm13 = vweird.f32 %v1653_v44 }
  0xee   : > { %v1103_v11 = vpop.eup %1102  ;;  %v650_v16 = vadd.f32 %v1099_v19, %v649_v63  ;;  %v702_v22 = vperm.slane %v698_v17, 0  ;;  %v317_v24 = vadd.f32 %v1534_v30, %v1676_v50  ;;  %vm1687_vm15 = vcmp.eq.f32.partialorder %v787_v14, 8.507059e+37 }
  0xef   : > { %v779_v18 = vmul.f32 %v1103_v11, %v1653_v44  ;;  %v790_v29 = vor.u32 1.1754944e-38, %v789_v45  ;;  %v491_v23 = vadd.f32 %v490_v2, %v489_v0  ;;  %1108 = vpow2.f32 %v730_v5  ;;  %v1691_v25 = vpop.eup %1104 }
  0xf0   : > { %v654_v48 = vsel %vm653_vm14, %v1099_v19, %v650_v16  ;;  %v578_v35 = vmul.f32 %v570_v33, %v1472_v21  ;;  %v321_v37 = vmul.f32 %v317_v24, %v317_v24  ;;  %v450_v30 = vadd.f32 %v446_v15, %v1676_v50 }
  0xf1   : > { %v1695_v27 = vpop.eup %1106  ;;  %v659_v6 = vsel %vm1664_vm11, %v658_v32, %v654_v48  ;;  %v780_v36 = vsub.f32 1.0, %v779_v18  ;;  %v492_v38 = vrot.slane %v491_v23, 2  ;;  %v621_v28 = vsel %vm335_vm0, %v1691_v25, 0.0 }
  0xf2   : > { %vm784_vm1 = vweird.f32 %v1103_v11  ;;  %v411_v39 = vmul.f32 %v1695_v27, %v1668_v31  ;;  %v622_v3 = vrot.slane %v621_v28, 4  ;;  %v710_v41 = vmul.f32 %v702_v22, %v1472_v21 }
  0xf3   : > { %v781_v46 = vmul.f32 %v1103_v11, %v780_v36  ;;  %v493_v47 = vadd.f32 %v492_v38, %v491_v23  ;;  %v325_v51 = vsub.f32 0.0, %v321_v37  ;;  %v454_v40 = vmul.f32 %v450_v30, %v450_v30  ;;  %vm785_vm2 = vmor %vm783_vm13, %vm784_vm1 }
  0xf4   : > { %v689_v54 = vmul.f32 %v1514_v59, %v659_v6  ;;  %v412_v4 = vsub.f32 1.0, %v411_v39  ;;  %v623_v55 = vadd.f32 %v622_v3, %v621_v28  ;;  %v582_v57 = vadd.f32 %v578_v35, %v1676_v50 }
  0xf5   : > { %v1706_v8 = vpop.eup %1108  ;;  %v782_v60 = vadd.f32 %v1103_v11, %v781_v46  ;;  %v494_v42 = vrot.slane %v493_v47, 1  ;;  %v331_v61 = vmul.f32 1.442695, %v325_v51  ;;  %v458_v19 = vsub.f32 0.0, %v454_v40 }
  0xf6   : > { %v693_v34 = vadd.f32 %v689_v54, %v561_v1  ;;  %v624_v21 = vrot.slane %v623_v55, 2  ;;  %v753_v43 = vsel %vm335_vm0, %v1706_v8, 0.0  ;;  %v586_v59 = vmul.f32 %v582_v57, %v582_v57 }
  0xf7   : > { %v786_v52 = vsel %vm785_vm2, %v1103_v11, %v782_v60  ;;  %v495_v49 = vadd.f32 %v494_v42, %v493_v47  ;;  %v754_v10 = vrot.slane %v753_v43, 4  ;;  %1110 = vpow2.f32 %v331_v61 }
  0xf8   : > { %v791_v9 = vsel %vm1687_vm15, %v790_v29, %v786_v52  ;;  %v413_v26 = vmul.f32 %v1695_v27, %v412_v4  ;;  %v625_v53 = vadd.f32 %v624_v21, %v623_v55  ;;  %v464_v13 = vmul.f32 1.442695, %v458_v19 }
  0xf9   : > { %v821_v62 = vmul.f32 %v1517_v7, %v791_v9  ;;  %v1717_v44 = vadd.f32 1e-05, %v495_v49  ;;  %v755_v12 = vadd.f32 %v754_v10, %v753_v43  ;;  %v590_v17 = vsub.f32 0.0, %v586_v59 }
  0xfa   : > { %v626_v32 = vrot.slane %v625_v53, 1  ;;  %1112 = vpow2.f32 %v464_v13  ;;  %v714_v14 = vadd.f32 %v710_v41, %v1676_v50  ;;  %v414_v63 = vadd.f32 %v1695_v27, %v413_v26 }
  0xfb   : > { %v825_v45 = vadd.f32 %v821_v62, %v693_v34  ;;  %1114 = vrcp.f32 %v1717_v44  ;;  %vm415_vm3 = vweird.f32 %v1668_v31  ;;  %vm416_vm4 = vweird.f32 %v1695_v27 }
  0xfc   : > { %v627_v0 = vadd.f32 %v626_v32, %v625_v53  ;;  %v756_v1 = vrot.slane %v755_v12, 2  ;;  %v596_v2 = vmul.f32 1.442695, %v590_v17  ;;  %v718_v5 = vmul.f32 %v714_v14, %v714_v14  ;;  %vm1732_vm5 = vmor %vm415_vm3, %vm416_vm4 }
  0xfd   : > { %v1724_v7 = vpop.eup %1110  ;;  %v829_v33 = vmul.f32 0.25, %v825_v45  ;;  %v419_v15 = vand.u32 2147483647, %v1668_v31  ;;  %v421_v50 = vand.u32 2147483648, %v1668_v31  ;;  %v418_v31 = vsel %vm1732_vm5, %v1695_v27, %v414_v63 }
  0xfe   : > { %v1728_v11 = vadd.f32 1e-05, %v627_v0  ;;  %v350_v16 = vsel %vm335_vm0, %v1724_v7, 0.0  ;;  %v757_v24 = vadd.f32 %v756_v1, %v755_v12  ;;  %1116 = vpow2.f32 %v596_v2 }
  0xff   : > { %833 = vst.msk [vmem:[%s1644_s1 + $0x4] sm:$0xf] %vm335_vm0, %v829_v33  ;;  %v351_v18 = vrot.slane %v350_v16, 4  ;;  %v722_v20 = vsub.f32 0.0, %v718_v5  ;;  %vm420_vm6 = vcmp.eq.f32.partialorder %v419_v15, 8.507059e+37  ;;  %v422_v6 = vor.u32 1.1754944e-38, %v421_v50 }
 0x100   : > { %v1738_v29 = vpop.eup %1112  ;;  %1118 = vrcp.f32 %v1728_v11  ;;  %v758_v48 = vrot.slane %v757_v24, 1  ;;  %v551_v27 = vand.u32 2147483647, %v1717_v44  ;;  %v553_v46 = vand.u32 2147483648, %v1717_v44 }
 0x101   : > { %v1115_v23 = vpop.eup %1114  ;;  %v352_v35 = vadd.f32 %v351_v18, %v350_v16  ;;  %v482_v37 = vsel %vm335_vm0, %v1738_v29, 0.0  ;;  %v728_v30 = vmul.f32 1.442695, %v722_v20  ;;  %v423_v3 = vsel %vm420_vm6, %v422_v6, %v418_v31 }
 0x102   : > { %v543_v36 = vmul.f32 %v1115_v23, %v1717_v44  ;;  %v759_v38 = vadd.f32 %v758_v48, %v757_v24  ;;  %v483_v39 = vrot.slane %v482_v37, 4  ;;  %vm548_vm7 = vweird.f32 %v1115_v23 }
 0x103   : > { %v353_v28 = vrot.slane %v352_v35, 2  ;;  %1120 = vpow2.f32 %v728_v30  ;;  %v427_v60 = vmul.f32 %v1565_v56, %v423_v3  ;;  %vm547_vm8 = vweird.f32 %v1717_v44 }
 0x104   : > { %v544_v41 = vsub.f32 1.0, %v543_v36  ;;  %v1749_v47 = vpop.eup %1116  ;;  %v1751_v51 = vadd.f32 1e-05, %v759_v38  ;;  %v484_v54 = vadd.f32 %v483_v39, %v482_v37  ;;  %vm552_vm9 = vcmp.eq.f32.partialorder %v551_v27, 8.507059e+37  ;;  %vm549_vm10 = vmor %vm547_vm8, %vm548_vm7 }
 0x105   : > { %v354_v40 = vadd.f32 %v353_v28, %v352_v35  ;;  %v614_v57 = vsel %vm335_vm0, %v1749_v47, 0.0  ;;  %v554_v19 = vor.u32 1.1754944e-38, %v553_v46  ;;  %v683_v59 = vand.u32 2147483647, %v1728_v11 }
 0x106   : > { %v1119_v4 = vpop.eup %1118  ;;  %v545_v55 = vmul.f32 %v1115_v23, %v544_v41  ;;  %1122 = vrcp.f32 %v1751_v51  ;;  %v485_v52 = vrot.slane %v484_v54, 2  ;;  %v615_v49 = vrot.slane %v614_v57, 4 }
 0x107   : > { %v675_v42 = vmul.f32 %v1119_v4, %v1728_v11  ;;  %v355_v34 = vrot.slane %v354_v40, 1  ;;  %vm680_vm11 = vweird.f32 %v1119_v4  ;;  %v685_v56 = vand.u32 2147483648, %v1728_v11 }
 0x108   : > { %v546_v61 = vadd.f32 %v1115_v23, %v545_v55  ;;  %v486_v13 = vadd.f32 %v485_v52, %v484_v54  ;;  %v616_v62 = vadd.f32 %v615_v49, %v614_v57  ;;  %vm679_vm12 = vweird.f32 %v1728_v11 }
 0x109   : > { %v1759_v21 = vpop.eup %1120  ;;  %v676_v43 = vsub.f32 1.0, %v675_v42  ;;  %v356_v9 = vadd.f32 %v355_v34, %v354_v40  ;;  %vm681_vm13 = vmor %vm679_vm12, %vm680_vm11  ;;  %vm684_vm14 = vcmp.eq.f32.partialorder %v683_v59, 8.507059e+37  ;;  %v815_v5 = vand.u32 2147483647, %v1751_v51 }
 0x10a   : > { %v550_v10 = vsel %vm549_vm10, %v1115_v23, %v546_v61  ;;  %v746_v17 = vsel %vm335_vm0, %v1759_v21, 0.0  ;;  %v487_v45 = vrot.slane %v486_v13, 1  ;;  %v617_v63 = vrot.slane %v616_v62, 2 }
 0x10b   : > { %v555_v26 = vsel %vm552_vm9, %v554_v19, %v550_v10  ;;  %v677_v53 = vmul.f32 %v1119_v4, %v676_v43  ;;  %v1765_v12 = vadd.f32 1e-05, %v356_v9  ;;  %v747_v0 = vrot.slane %v746_v17, 4 }
 0x10c   : > { %v559_v44 = vmul.f32 %v1670_v58, %v555_v26  ;;  %v1123_v32 = vpop.eup %1122  ;;  %v686_v58 = vor.u32 1.1754944e-38, %v685_v56  ;;  %v488_v15 = vadd.f32 %v487_v45, %v486_v13  ;;  %v618_v50 = vadd.f32 %v617_v63, %v616_v62 }
 0x10d   : > { %v678_v14 = vadd.f32 %v1119_v4, %v677_v53  ;;  %v807_v33 = vmul.f32 %v1123_v32, %v1751_v51  ;;  %1124 = vrcp.f32 %v1765_v12  ;;  %v817_v22 = vand.u32 2147483648, %v1751_v51 }
 0x10e   : > { %v563_v11 = vadd.f32 %v559_v44, %v427_v60  ;;  %v748_v24 = vadd.f32 %v747_v0, %v746_v17  ;;  %vm812_vm15 = vweird.f32 %v1123_v32  ;;  %v498_v20 = vadd.f32 1e-05, %v488_v15 }
 0x10f   : > { %v682_v1 = vsel %vm681_vm13, %v1119_v4, %v678_v14  ;;  %v808_v2 = vsub.f32 1.0, %v807_v33  ;;  %v619_v31 = vrot.slane %v618_v50, 1  ;;  %vm811_vm1 = vweird.f32 %v1751_v51 }
 0x110   : > { %v687_v16 = vsel %vm684_vm14, %v686_v58, %v682_v1  ;;  %v749_v23 = vrot.slane %v748_v24, 2  ;;  %1126 = vrcp.f32 %v498_v20  ;;  %vm813_vm2 = vmor %vm811_vm1, %vm812_vm15  ;;  %v818_v30 = vor.u32 1.1754944e-38, %v817_v22 }
 0x111   : > { %v809_v18 = vmul.f32 %v1123_v32, %v808_v2  ;;  %v691_v35 = vmul.f32 %v1691_v25, %v687_v16  ;;  %v620_v36 = vadd.f32 %v619_v31, %v618_v50  ;;  %vm816_vm3 = vcmp.eq.f32.partialorder %v815_v5, 8.507059e+37 }
 0x112   : > { %v750_v39 = vadd.f32 %v749_v23, %v748_v24  ;;  %v407_v4 = vand.u32 2147483648, %v1765_v12  ;;  %vm401_vm5 = vweird.f32 %v1765_v12  ;;  %v405_v60 = vand.u32 2147483647, %v1765_v12 }
 0x113   : > { %v1125_v48 = vpop.eup %1124  ;;  %v810_v37 = vadd.f32 %v1123_v32, %v809_v18  ;;  %v695_v38 = vadd.f32 %v691_v35, %v563_v11  ;;  %v630_v27 = vadd.f32 1e-05, %v620_v36  ;;  %v539_v59 = vand.u32 2147483648, %v498_v20 }
 0x114   : > { %v397_v6 = vmul.f32 %v1125_v48, %v1765_v12  ;;  %v751_v40 = vrot.slane %v750_v39, 1  ;;  %vm402_vm4 = vweird.f32 %v1125_v48  ;;  %v408_v43 = vor.u32 1.1754944e-38, %v407_v4 }
 0x115   : > { %v814_v28 = vsel %vm813_vm2, %v1123_v32, %v810_v37  ;;  %1128 = vrcp.f32 %v630_v27  ;;  %vm403_vm6 = vmor %vm401_vm5, %vm402_vm4  ;;  %vm406_vm7 = vcmp.eq.f32.partialorder %v405_v60, 8.507059e+37  ;;  %v537_v10 = vand.u32 2147483647, %v498_v20 }
 0x116   : > { %v819_v3 = vsel %vm816_vm3, %v818_v30, %v814_v28  ;;  %v398_v41 = vsub.f32 1.0, %v397_v6  ;;  %v1127_v51 = vpop.eup %1126  ;;  %v752_v55 = vadd.f32 %v751_v40, %v750_v39  ;;  %vm533_vm9 = vweird.f32 %v498_v20 }
 0x117   : > { %v823_v46 = vmul.f32 %v1706_v8, %v819_v3  ;;  %v529_v42 = vmul.f32 %v1127_v51, %v498_v20  ;;  %vm534_vm8 = vweird.f32 %v1127_v51  ;;  %v540_v53 = vor.u32 1.1754944e-38, %v539_v59 }
 0x118   : > { %v399_v25 = vmul.f32 %v1125_v48, %v398_v41  ;;  %v762_v19 = vadd.f32 1e-05, %v752_v55  ;;  %vm535_vm10 = vmor %vm533_vm9, %vm534_vm8  ;;  %vm538_vm11 = vcmp.eq.f32.partialorder %v537_v10, 8.507059e+37  ;;  %v671_v12 = vand.u32 2147483648, %v630_v27 }
 0x119   : > { %v827_v54 = vadd.f32 %v823_v46, %v695_v38  ;;  %v530_v34 = vsub.f32 1.0, %v529_v42  ;;  %v669_v45 = vand.u32 2147483647, %v630_v27  ;;  %vm665_vm13 = vweird.f32 %v630_v27 }
 0x11a   : > { %v400_v57 = vadd.f32 %v1125_v48, %v399_v25  ;;  %1130 = vrcp.f32 %v762_v19  ;;  %v672_v58 = vor.u32 1.1754944e-38, %v671_v12  ;;  %v801_v11 = vand.u32 2147483647, %v762_v19 }
 0x11b   : > { %v831_v61 = vmul.f32 0.25, %v827_v54  ;;  %v1129_v52 = vpop.eup %1128  ;;  %v531_v49 = vmul.f32 %v1127_v51, %v530_v34  ;;  %vm670_vm15 = vcmp.eq.f32.partialorder %v669_v45, 8.507059e+37  ;;  %vm797_vm2 = vweird.f32 %v762_v19 }
 0x11c   : > { %v404_v8 = vsel %vm403_vm6, %v1125_v48, %v400_v57  ;;  %v661_v9 = vmul.f32 %v1129_v52, %v630_v27  ;;  %vm666_vm12 = vweird.f32 %v1129_v52  ;;  %vm802_vm4 = vcmp.eq.f32.partialorder %v801_v11, 8.507059e+37 }
 0x11d   : > { %835 = vst.msk [vmem:[%s1644_s1 + $0xc] sm:$0xf] %vm335_vm0, %v831_v61  ;;  %v409_v56 = vsel %vm406_vm7, %v408_v43, %v404_v8  ;;  %v532_v26 = vadd.f32 %v1127_v51, %v531_v49  ;;  %vm667_vm14 = vmor %vm665_vm13, %vm666_vm12 }
 0x11e   : > { %v662_v13 = vsub.f32 1.0, %v661_v9  ;;  %v426_v62 = vmul.f32 %v1724_v7, %v409_v56  ;;  %v803_v7 = vand.u32 2147483648, %v762_v19 }
 0x11f   : > { %v536_v44 = vsel %vm535_vm10, %v1127_v51, %v532_v26 }
 0x120   : > { %v1131_v17 = vpop.eup %1130  ;;  %v541_v32 = vsel %vm538_vm11, %v540_v53, %v536_v44  ;;  %v663_v14 = vmul.f32 %v1129_v52, %v662_v13 }
 0x121   : > { %v558_v63 = vmul.f32 %v1738_v29, %v541_v32  ;;  %v793_v0 = vmul.f32 %v1131_v17, %v762_v19  ;;  %vm798_vm1 = vweird.f32 %v1131_v17  ;;  %v804_v29 = vor.u32 1.1754944e-38, %v803_v7 }
 0x122   : > { %v664_v33 = vadd.f32 %v1129_v52, %v663_v14  ;;  %vm799_vm3 = vmor %vm797_vm2, %vm798_vm1 }
 0x123   : > { %v562_v1 = vadd.f32 %v558_v63, %v426_v62  ;;  %v794_v2 = vsub.f32 1.0, %v793_v0 }
 0x124   : > { %v668_v5 = vsel %vm667_vm14, %v1129_v52, %v664_v33 }
 0x125   : > { %v673_v15 = vsel %vm670_vm15, %v672_v58, %v668_v5  ;;  %v795_v50 = vmul.f32 %v1131_v17, %v794_v2 }
 0x126   : > { %v690_v16 = vmul.f32 %v1749_v47, %v673_v15 }
 0x127   : > { %v796_v22 = vadd.f32 %v1131_v17, %v795_v50 }
 0x128   : > { %v694_v24 = vadd.f32 %v690_v16, %v562_v1 }
 0x129   : > { %v800_v18 = vsel %vm799_vm3, %v1131_v17, %v796_v22 }
 0x12a   : > { %v805_v20 = vsel %vm802_vm4, %v804_v29, %v800_v18 }
 0x12b   : > { %v822_v31 = vmul.f32 %v1759_v21, %v805_v20 }
 0x12d   : > { %v826_v47 = vadd.f32 %v822_v31, %v694_v24 }
 0x12f   : > { %v830_v23 = vmul.f32 0.25, %v826_v47 }
 0x131   : > { %834 = vst.msk [vmem:[%s1644_s1 + $0x8] sm:$0xf] %vm335_vm0, %v830_v23 }
 0x132   : > { %1249 = shalt.err (!%p1246_p1)
}
 0x133   : > { %s1314_s19 = smov 64   ;;  %s1315_s26 = smov 4  }
 0x134   : > { %988 = dma.vmem_to_hbm [thread:$0]  (%p1388_p8), %s851_s15, 256, %s853_s11, %s837_s22, %s1314_s19, %s1314_s19, %s1315_s26  }
 0x135 PF: > { %s867_s27 = sand.u32 1, %s1288_s12   ;;  %p1002_p2 = pnand %p962_p13, %p1392_p9 }
 0x136   : > { %s868_s20 = scalar_lea.sflag [#allocation4], %s867_s27 }
 0x137   : > { %p1003_p4 = pneg %p1002_p2 }
 0x139   : > { %1283 = dma.done.wait (%p1003_p4), %s868_s20, 256  }
 0x13a   : > { %1285 = vsyncadd (%p1003_p4), %s868_s20, 4294967040  ;;  %s20_s17 = sadd.s32 1, %s1308_s17   ;;  %s1859_s12 = smov %s1292_s13 }
 0x13b   : > { %p17_p6 = scmp.ge.s32.totalorder %s20_s17, 4   ;;  %s1860_s13 = smov %s1296_s14 }
 0x13c   : > { %s1861_s14 = smov %s1433_s7  ;;  %s1862_s15 = smov %s1304_s16 }
 0x13d   : > { %s1863_s16 = smov %s1865_s18  ;;  %19 = sbr.rel (!%p17_p6) target bundleno = 9 (0x9), region = 85 }
 0x142   :  { %874 = vsyncpa [#allocation3], 1 }
 0x143   :  { %876 = vsyncpa [#allocation3 + $0x1], 1 }
 0x144   :  { %877 = vsyncpa [#allocation6], 1 }
 0x145   :  { %878 = vsyncpa [#allocation4], 1 }
 0x146   :  { %880 = vsyncpa [#allocation4 + $0x1], 1 }

</bundles_post_ra>
